<compile_context>
chip_gen: v7x
topology: tpu7x:2x2x1
jax: 0.10.0
libtpu: 0.0.40
codegen_flags: <defaults>
</compile_context>

<pallas_src>
import functools

import jax
import jax.numpy as jnp
from jax import lax
from jax.experimental import pallas as pl
from jax.experimental.pallas import tpu as pltpu

EPS = 1e-5
LANE = 128
SUBLANE = 8


def _tile_target_and_vmem_limit():
    """Per-generation streaming-tile byte budget and scoped-VMEM limit."""
    try:
        kind = jax.devices()[0].device_kind.lower()
    except Exception:  # defensive: fall back to conservative settings
        kind = ""
    if "v7" in kind or "tpu7" in kind:
        # ~3.2 TB/s per TC: bigger tiles amortize the ~0.35us/step overhead.
        # Double-buffered in+out footprint ~24 MiB -> raise the scoped limit.
        return 6 * 1024 * 1024, 40 << 20
    if "v6" in kind:
        # ~16 MiB pipelined footprint fits the 32 MiB default scoped VMEM.
        return 4 * 1024 * 1024, None
    # v5e (16 MiB default scoped VMEM) or unknown: stay conservative.
    return 2 * 1024 * 1024, None


def _choose_tiles(rows, cols, itemsize, target_bytes):
    """Pick (tm, tn) for the (rows, cols) = (N*C, H*W) view.

    Obeys the native-tile rule (multiples of (8*packing, 128) or the full dim)
    while targeting ~target_bytes per x tile.
    """
    # Sub-32-bit dtypes pack 2/4 rows per sublane: match the native packing so
    # streaming loads/stores stay dense (8 for f32, 16 for bf16, 32 for int8).
    sub = SUBLANE * max(1, 4 // max(1, itemsize))

    # Lane (last-dim) tile: the full dim is always legal.
    max_lane = max(LANE, target_bytes // (sub * itemsize))
    if cols <= max_lane:
        tn = cols
    else:
        cap = (max_lane // LANE) * LANE
        tn = cap
        # Prefer the largest multiple of 128 that divides cols exactly: avoids
        # a masked partial column block at the end of every row band.
        for cand in range(cap, LANE - 1, -LANE):
            if cols % cand == 0:
                tn = cand
                break

    # Sublane (row) tile.
    if rows <= sub:
        tm = rows                                        # full dim is legal
    else:
        budget_rows = max(sub, target_bytes // max(1, tn * itemsize))
        tm = max(sub, (min(rows, budget_rows) // sub) * sub)
    return tm, tn


def frozen_bn_kernel(params_ref, x_ref, o_ref, *, tm):
    # params_ref : (rows_p, 2) f32, fully VMEM-resident; col 0 = scale, 1 = shift
    # x_ref/o_ref: (tm, tn) streamed tile of the (N*C, H*W) view
    i = pl.program_id(0)
    r0 = i * tm
    if tm % SUBLANE == 0:
        r0 = pl.multiple_of(r0, tm)
    p = params_ref[pl.ds(r0, tm), :]                     # (tm, 2)
    scale = p[:, 0:1]                                    # (tm, 1)
    shift = p[:, 1:2]                                    # (tm, 1)
    o_ref[...] = (x_ref[...] * scale + shift).astype(o_ref.dtype)


def frozen_batch_norm_2d(x, weight, bias, running_mean, running_var,
                         eps=EPS, donate_x=False):
    """x: (N, C, H, W); params: (C,). Returns (N, C, H, W) with x.dtype."""
    N, C, H, W = x.shape
    rows, cols = N * C, H * W
    x2 = x.reshape(rows, cols)
    itemsize = x2.dtype.itemsize

    # Fold the four per-channel buffers into two (f32 math, O(C) work only).
    w32 = weight.astype(jnp.float32)
    b32 = bias.astype(jnp.float32)
    rm32 = running_mean.astype(jnp.float32)
    rv32 = running_var.astype(jnp.float32)
    scale_c = w32 * lax.rsqrt(rv32 + eps)                # (C,)
    shift_c = b32 - rm32 * scale_c                       # (C,)

    target_bytes, vmem_limit = _tile_target_and_vmem_limit()
    tm, tn = _choose_tiles(rows, cols, itemsize, target_bytes)
    grid_rows = pl.cdiv(rows, tm)

    # One VMEM-resident param table: row r = n*C + c -> (scale_c[c], shift_c[c]).
    # Padded to grid_rows*tm rows so the in-kernel pl.ds slice never runs OOB.
    rows_p = grid_rows * tm
    params = jnp.stack([jnp.tile(scale_c, N), jnp.tile(shift_c, N)], axis=1)
    if rows_p > rows:
        params = jnp.pad(params, ((0, rows_p - rows), (0, 0)))

    kernel = functools.partial(frozen_bn_kernel, tm=tm)
    params_spec = pl.BlockSpec(memory_space=pltpu.MemorySpace.VMEM)

    if tn == cols:
        # Common case: one contiguous row band per step -> 1-D grid, no j axis.
        grid = (grid_rows,)
        x_spec = pl.BlockSpec((tm, tn), lambda i: (i, 0))
        out_spec = pl.BlockSpec((tm, tn), lambda i: (i, 0))
        semantics = ("parallel",)
    else:
        grid = (grid_rows, pl.cdiv(cols, tn))
        x_spec = pl.BlockSpec((tm, tn), lambda i, j: (i, j))
        out_spec = pl.BlockSpec((tm, tn), lambda i, j: (i, j))
        semantics = ("parallel", "parallel")

    compiler_kwargs = dict(dimension_semantics=semantics)
    if vmem_limit is not None:
        compiler_kwargs["vmem_limit_bytes"] = vmem_limit

    out2 = pl.pallas_call(
        kernel,
        out_shape=jax.ShapeDtypeStruct((rows, cols), x.dtype),
        grid_spec=pltpu.PrefetchScalarGridSpec(
            num_scalar_prefetch=0,
            grid=grid,
            in_specs=[params_spec, x_spec],
            out_specs=out_spec,
        ),
        compiler_params=pltpu.CompilerParams(**compiler_kwargs),
        cost_estimate=pl.CostEstimate(
            flops=2 * rows * cols,
            bytes_accessed=2 * rows * cols * itemsize + params.size * 4,
            transcendentals=0,
        ),
        # x2 is input index 1 (params is 0): alias to the output when the
        # caller can donate x (saves a full-size HBM allocation).
        input_output_aliases=({1: 0} if donate_x else {}),
    )(params, x2)

    return out2.reshape(N, C, H, W)


def _reference(x, weight, bias, running_mean, running_var, eps=EPS):
    C = x.shape[1]
    w = weight.reshape(1, C, 1, 1).astype(jnp.float32)
    b = bias.reshape(1, C, 1, 1).astype(jnp.float32)
    rv = running_var.reshape(1, C, 1, 1).astype(jnp.float32)
    rm = running_mean.reshape(1, C, 1, 1).astype(jnp.float32)
    scale = w * lax.rsqrt(rv + eps)
    shift = b - rm * scale
    return (x.astype(jnp.float32) * scale + shift).astype(x.dtype)


def _run_case(key, N, C, H, W, dtype=jnp.float32):
    kx, kw, kb, km, kv = jax.random.split(key, 5)
    x = jax.random.normal(kx, (N, C, H, W), dtype=jnp.float32).astype(dtype)
    # Non-trivial frozen parameters so the affine math is exercised.
    weight = 1.0 + 0.1 * jax.random.normal(kw, (C,), dtype=jnp.float32)
    bias = 0.1 * jax.random.normal(kb, (C,), dtype=jnp.float32)
    running_mean = 0.5 * jax.random.normal(km, (C,), dtype=jnp.float32)
    running_var = jnp.abs(jax.random.normal(kv, (C,), dtype=jnp.float32)) + 0.5

    y = frozen_batch_norm_2d(x, weight, bias, running_mean, running_var)
    y = jax.block_until_ready(y)
    y_ref = _reference(x, weight, bias, running_mean, running_var)

    assert y.shape == (N, C, H, W) and y.dtype == x.dtype
    tol = 1e-5 if dtype == jnp.float32 else 2e-2
    assert jnp.allclose(y.astype(jnp.float32), y_ref.astype(jnp.float32),
                        atol=tol, rtol=tol)


if __name__ == "__main__":
    key = jax.random.PRNGKey(0)
    k1, k2, k3, k4 = jax.random.split(key, 4)

    # Primary small case consistent with the module (single row band, 1-D grid).
    _run_case(k1, N=2, C=4, H=16, W=16)
    # Odd spatial / channel sizes: full-dim (unpadded) blocks.
    _run_case(k2, N=2, C=3, H=7, W=9)
    # rows = 12 > tm = 8: partial boundary row block + padded VMEM param table.
    _run_case(k3, N=3, C=4, H=16, W=24)
    # bf16 activations: exercises the dtype-aware (16-row) sublane rounding.
    _run_case(k4, N=4, C=8, H=16, W=16, dtype=jnp.bfloat16)

    print("KERNEL_OK")
</pallas_src>

<mosaic_0001>
module attributes {stable_mosaic.version = 11 : i64} {
  func.func @frozen_bn_kernel(%arg0: i32, %arg1: memref<8x2xf32, #tpu.memory_space<vmem>>, %arg2: memref<8x256xf32, #tpu.memory_space<vmem>>, %arg3: memref<8x256xf32, #tpu.memory_space<vmem>>) attributes {dimension_semantics = [#tpu.dimension_semantics<parallel>], iteration_bounds = array<i64: 1>, scalar_prefetch = 0 : i64, scratch_operands = 0 : i64, tpu.core_type = #tpu.core_type<tc>, window_params = [{pipeline_mode = #tpu.pipeline_mode<synchronous>, transform_indices = @transform_0, window_bounds = array<i64: 8, 2>}, {transform_indices = @transform_1, window_bounds = array<i64: 8, 256>}, {transform_indices = @transform_2, window_bounds = array<i64: 8, 256>}]} {
    %c8_i32 = arith.constant 8 : i32
    %0 = arith.muli %arg0, %c8_i32 : i32
    %1 = tpu.assume_multiple %0, 8 : i32
    %2 = arith.index_cast %1 : i32 to index
    %c0 = arith.constant 0 : index
    %3 = vector.load %arg1[%2, %c0] : memref<8x2xf32, #tpu.memory_space<vmem>>, vector<8x2xf32>
    %4 = vector.extract_strided_slice %3 {offsets = [0, 0], sizes = [8, 1], strides = [1, 1]} : vector<8x2xf32> to vector<8x1xf32>
    %5 = vector.extract_strided_slice %3 {offsets = [0, 1], sizes = [8, 1], strides = [1, 1]} : vector<8x2xf32> to vector<8x1xf32>
    %c0_0 = arith.constant 0 : index
    %c0_1 = arith.constant 0 : index
    %6 = vector.load %arg2[%c0_0, %c0_1] : memref<8x256xf32, #tpu.memory_space<vmem>>, vector<8x256xf32>
    %7 = vector.broadcast %4 : vector<8x1xf32> to vector<8x256xf32>
    %8 = arith.mulf %6, %7 : vector<8x256xf32>
    %9 = vector.broadcast %5 : vector<8x1xf32> to vector<8x256xf32>
    %10 = arith.addf %8, %9 : vector<8x256xf32>
    %c0_2 = arith.constant 0 : index
    %c0_3 = arith.constant 0 : index
    %11 = vector.load %arg3[%c0_2, %c0_3] : memref<8x256xf32, #tpu.memory_space<vmem>>, vector<8x256xf32>
    tpu.vector_store %arg3[%c0_2, %c0_3], %10 {strides = array<i32>} : memref<8x256xf32, #tpu.memory_space<vmem>>, vector<8x256xf32>,
    return
  }
  func.func @transform_0(%arg0: i32) -> (i32, i32) {
    %c0_i32 = arith.constant 0 : i32
    %c0_i32_0 = arith.constant 0 : i32
    %c0_i32_1 = arith.constant 0 : i32
    return %c0_i32, %c0_i32_0 : i32, i32
  }
  func.func @transform_1(%arg0: i32) -> (i32, i32) {
    %c0_i32 = arith.constant 0 : i32
    %c0_i32_0 = arith.constant 0 : i32
    return %arg0, %c0_i32 : i32, i32
  }
  func.func @transform_2(%arg0: i32) -> (i32, i32) {
    %c0_i32 = arith.constant 0 : i32
    %c0_i32_0 = arith.constant 0 : i32
    return %arg0, %c0_i32 : i32, i32
  }
}

</mosaic_0001>

<bundles_post_ra>
// kernel: tpu_custom_call.1
= control target key start
LH: loop header
LB: loop body
LE: loop exit
PB: predicated region body
PF: predicated region fallthrough
CT: control target
= control target key end

     0   :  { %7 = vsyncpa [#allocation3], 0  ;;  %s159_s0 = inlined_call_operand.vmem [shape: f32[8,2], index: 0, kind: input, shape index: {}]   ;;  %s160_s1 = inlined_call_operand.hbm [shape: f32[8,256], index: 1, kind: input, shape index: {}]   ;;  %s161_s2 = inlined_call_operand.hbm [shape: f32[8,256], index: 2, kind: output, shape index: {}]  }
   0x1   :  { %8 = vsyncpa [#allocation4], 0  ;;  %s113_s9 = smov [#allocation2]   ;;  %s65_s13 = scalar_lea.hbm %s160_s1, 256 }
   0x2   :  { %s17_s10 = sshll.u32 %s113_s9, 4  ;;  %p66_p0 = scmp.ne.s32.totalorder %s160_s1, %s65_s13  ;;  %s18_s10 = int_to_ptr.vmem [resolvable:$true] %s17_s10 }
   0x3   :  { %p69_p1 = scmp.lt.u32.totalorder %s65_s13, %s160_s1 }
   0x5   :  { %p71_p2 = pnand %p69_p1, %p66_p0 }
   0x7   :  { %74 = shalt.err (!%p71_p2)
}
   0x8   :  { %s75_s18 = scalar_lea.vmem %s18_s10, 256  ;;  %p80_p4 = scmp.lt.s32.totalorder %s18_s10, %s18_s10 }
   0x9   :  { %p76_p3 = scmp.ne.s32.totalorder %s18_s10, %s75_s18  ;;  %p81_p5 = scmp.lt.s32.totalorder %s75_s18, %s75_s18 }
   0xb   :  { %p82_p6 = por %p81_p5, %p80_p4 }
   0xd   :  { %p83_p7 = pnand %p82_p6, %p76_p3 }
   0xf   :  { %86 = shalt.err (!%p83_p7)
}
  0x10   :  { %20 = dma.hbm_to_vmem [thread:$0]  %s160_s1, 256, %s18_s10, [#allocation3]  }
  0x11   :  { %109 = dma.done.wait [#allocation3], 256  }
  0x12   :  { %110 = vsyncadd [#allocation3], 4294967040  ;;  %v114_v0 = vmov 0   ;;  %v26_v1 = vld [vmem:[%s159_s0] sm:$0xff]  ;;  %v115_v2 = vmov 1   ;;  %v28_v5 = vld [vmem:[#allocation2 + $0x8] sm:$0xff] }
  0x13   :  { %63 = vset.pattern.permute.xlu0 %v114_v0  ;;  %v27_v4 = vld [vmem:[#allocation2] sm:$0xff]  ;;  %s116_s23 = smov [#allocation5]  }
  0x14   :  { %31 = vperm.xlu0 %63, %v26_v1   ;;  %s50_s24 = sshll.u32 %s116_s23, 4  ;;  %s51_s24 = int_to_ptr.vmem [resolvable:$true] %s50_s24 }
  0x15   :  { %s87_s1 = scalar_lea.vmem %s51_s24, 256  ;;  %p92_p9 = scmp.lt.s32.totalorder %s51_s24, %s51_s24 }
  0x16   :  { %p88_p8 = scmp.ne.s32.totalorder %s51_s24, %s87_s1  ;;  %p93_p10 = scmp.lt.s32.totalorder %s87_s1, %s87_s1 }
  0x18   :  { %64 = vset.pattern.permute.xlu0 %v115_v2  ;;  %p94_p11 = por %p93_p10, %p92_p9 }
  0x19   :  { %37 = vperm.xlu0 %64, %v26_v1  }
  0x1a   :  { %p95_p12 = pnand %p94_p11, %p88_p8 }
  0x93   :  { %v32_v3 = vpop.permute.xlu0 %31 }
  0x94   :  { %v34_v6 = vmul.f32 %v32_v3, %v27_v4  ;;  %v35_v7 = vmul.f32 %v32_v3, %v28_v5 }
  0x98   :  { %v38_v8 = vpop.permute.xlu0 %37 }
  0x99   :  { %v40_v9 = vadd.f32 %v38_v8, %v34_v6  ;;  %v41_v10 = vadd.f32 %v38_v8, %v35_v7 }
  0x9b   :  { %42 = vst [vmem:[#allocation5] sm:$0xff] %v40_v9  ;;  %43 = vst [vmem:[#allocation5 + $0x8] sm:$0xff] %v41_v10 }
  0x9c   :  { %98 = shalt.err (!%p95_p12)
}
  0x9d   :  { %s99_s26 = scalar_lea.hbm %s161_s2, 256 }
  0x9e   :  { %p100_p13 = scmp.ne.s32.totalorder %s161_s2, %s99_s26  ;;  %p103_p0 = scmp.lt.u32.totalorder %s99_s26, %s161_s2 }
  0xa0   :  { %p105_p1 = pnand %p103_p0, %p100_p13 }
  0xa2   :  { %108 = shalt.err (!%p105_p1)
}
  0xa3   :  { %53 = dma.vmem_to_hbm [thread:$0]  %s51_s24, 256, %s161_s2, [#allocation4]  }
  0xa4   :  { %111 = dma.done.wait [#allocation4], 256  }
  0xa5   :  { %112 = vsyncadd [#allocation4], 4294967040 }
  0xa6   :  { %57 = vsyncpa [#allocation3], 1 }
  0xa7   :  { %58 = vsyncpa [#allocation4], 1 }

</bundles_post_ra>
